<compile_context>
chip_gen: v6e
topology: v6e:2x2x1
jax: 0.10.0
libtpu: 0.0.40
codegen_flags: <defaults>
</compile_context>

<pallas_src>
import functools
import math

import jax
import jax.numpy as jnp
from jax.experimental import pallas as pl
from jax.experimental.pallas import tpu as pltpu


# Per-image (C, H*W) slab size (native dtype) below which a single fused pallas_call
# keeps the whole slab resident in VMEM (covers every ECA use in ResNet-18/50).
_FAST_PATH_LIMIT_BYTES = 2 * 1024 * 1024
# Streaming-path budget for one (1, C, hw_t) block (native dtype).
_TILE_TARGET_BYTES = 2 * 1024 * 1024


# --------------------------------------------------------------------------
# In-kernel helpers
# --------------------------------------------------------------------------
def _gate_from_sums(sums, w_ref, inv_hw, c):
    """sigmoid(conv1d_k3_pad1(sums * inv_hw)) along the channel axis.

    sums : (1, C, 1) f32 per-channel sums (channels on sublanes).
    w_ref: (3,) conv taps in SMEM.
    Returns a (1, C, 1) f32 gate.

    The zero-padded 3-tap conv is a tridiagonal matvec.  The (C, C) band matrix is
    built in-registers from iotas once per image (no HBM traffic) and the matvec runs
    on the otherwise-idle MXU, avoiding cross-sublane shifts on the (1, C, 1) layout.
    """
    p = (sums * inv_hw).reshape(c, 1)                         # free (leading-dim) reshape
    rows = jax.lax.broadcasted_iota(jnp.int32, (c, c), 0)     # output channel i
    cols = jax.lax.broadcasted_iota(jnp.int32, (c, c), 1)     # input channel j
    d = cols - rows
    band = (jnp.where(d == -1, w_ref[0], 0.0)                 # j == i-1 -> w0
            + jnp.where(d == 0, w_ref[1], 0.0)                # j == i   -> w1
            + jnp.where(d == 1, w_ref[2], 0.0))               # j == i+1 -> w2
    y = jnp.dot(band, p, preferred_element_type=jnp.float32)  # (C, 1)
    return jax.nn.sigmoid(y).reshape(1, c, 1)


# --------------------------------------------------------------------------
# Pallas kernels
# --------------------------------------------------------------------------
def _eca_fused_kernel(w_ref, x_ref, o_ref, *, inv_hw, c):
    """Fast path: whole-image ECA (pool + channel conv + sigmoid + gating) in one pass.

    x_ref/o_ref: (1, C, HW) blocks in x's native dtype (full array dims, VMEM resident).
    """
    x = x_ref[...].astype(jnp.float32)                 # upcast in vregs
    sums = jnp.sum(x, axis=-1, keepdims=True)          # (1, C, 1) f32
    gate = _gate_from_sums(sums, w_ref, inv_hw, c)     # (1, C, 1) f32
    o_ref[...] = (x * gate).astype(o_ref.dtype)        # write back in native dtype


def _pool_gate_kernel(w_ref, x_ref, g_ref, *, hw, hw_t, inv_hw, c, ragged):
    """Streaming pass 1: per-channel sums accumulated across HW tiles; the last tile
    turns the resident accumulator into the sigmoid(conv1d) gate in place.

    x_ref: (1, C, hw_t) native-dtype tile.   g_ref: (1, C, 1) f32, output-resident.
    """
    j = pl.program_id(1)

    @pl.when(j == 0)
    def _():
        g_ref[...] = jnp.zeros_like(g_ref)

    x = x_ref[...].astype(jnp.float32)
    if ragged:
        # Mask the undefined padding of the ragged last tile before reducing.
        lane = jax.lax.broadcasted_iota(jnp.int32, x.shape, 2)
        x = jnp.where(j * hw_t + lane < hw, x, 0.0)
    g_ref[...] += jnp.sum(x, axis=-1, keepdims=True)

    @pl.when(j == pl.num_programs(1) - 1)
    def _():
        g_ref[...] = _gate_from_sums(g_ref[...], w_ref, inv_hw, c)


def _apply_gate_kernel(x_ref, g_ref, o_ref):
    """Streaming pass 2: o = x * gate, (1, C, 1) gate broadcast over a lane-dense tile."""
    o_ref[...] = (x_ref[...].astype(jnp.float32) * g_ref[...]).astype(o_ref.dtype)


# --------------------------------------------------------------------------
# Wrapper
# --------------------------------------------------------------------------
def _pick_hw_tile(hw, c, itemsize, target_bytes):
    """Largest 128-multiple hw_t with a (C, hw_t) native-dtype block ~<= target_bytes.
    The grid uses pl.cdiv, so hw_t need not divide hw (ragged tail masked in-kernel)."""
    cols_budget = max(1, target_bytes // (max(c, 1) * itemsize * 128))
    cols_needed = pl.cdiv(hw, 128)
    return 128 * max(1, min(cols_budget, cols_needed))


def _eca_forward(x, conv_w, *, fast_path_limit_bytes=_FAST_PATH_LIMIT_BYTES,
                 tile_target_bytes=_TILE_TARGET_BYTES):
    """ECA module forward.  x: (N, C, H, W) NCHW, conv_w: (3,) Conv1d taps (no bias)."""
    n, c, h, w = x.shape
    hw = h * w
    xf = x.reshape(n, c, hw)                       # free reshape, stays in native dtype
    wf = conv_w.reshape(3).astype(jnp.float32)
    inv_hw = 1.0 / hw
    itemsize = jnp.dtype(x.dtype).itemsize
    smem_spec = pl.BlockSpec(memory_space=pltpu.MemorySpace.SMEM)

    if c * hw * itemsize <= fast_path_limit_bytes:
        # ---- fast path: single pallas_call, slab resident in VMEM (x read once,
        # ---- out written once); batch axis parallel for megacore / v7x 2-TC chips.
        out = pl.pallas_call(
            functools.partial(_eca_fused_kernel, inv_hw=inv_hw, c=c),
            out_shape=jax.ShapeDtypeStruct((n, c, hw), x.dtype),
            grid=(n,),
            in_specs=[smem_spec,
                      pl.BlockSpec((1, c, hw), lambda b: (b, 0, 0))],
            out_specs=pl.BlockSpec((1, c, hw), lambda b: (b, 0, 0)),
            compiler_params=pltpu.CompilerParams(
                dimension_semantics=("parallel",)),
        )(wf, xf)
        return out.reshape(n, c, h, w)

    # ---- streaming path (large images): pool+gate fused pass, then apply pass -----
    hw_t = _pick_hw_tile(hw, c, itemsize, tile_target_bytes)
    n_hw = pl.cdiv(hw, hw_t)
    ragged = (hw % hw_t) != 0

    gate = pl.pallas_call(
        functools.partial(_pool_gate_kernel, hw=hw, hw_t=hw_t, inv_hw=inv_hw,
                          c=c, ragged=ragged),
        out_shape=jax.ShapeDtypeStruct((n, c, 1), jnp.float32),
        grid=(n, n_hw),
        in_specs=[smem_spec,
                  pl.BlockSpec((1, c, hw_t), lambda b, j: (b, 0, j))],
        out_specs=pl.BlockSpec((1, c, 1), lambda b, j: (b, 0, 0)),
        compiler_params=pltpu.CompilerParams(
            dimension_semantics=("parallel", "arbitrary")),
    )(wf, xf)
    # Note: on v7x with tiny N the pool pass could additionally shard the HW axis
    # across the 2 TensorCores via per-core partial sums; skipped here because every
    # realistic ECA size takes the fully-fused fast path above.

    out = pl.pallas_call(
        _apply_gate_kernel,
        out_shape=jax.ShapeDtypeStruct((n, c, hw), x.dtype),
        grid=(n, n_hw),
        in_specs=[pl.BlockSpec((1, c, hw_t), lambda b, j: (b, 0, j)),
                  pl.BlockSpec((1, c, 1), lambda b, j: (b, 0, 0))],
        out_specs=pl.BlockSpec((1, c, hw_t), lambda b, j: (b, 0, j)),
        compiler_params=pltpu.CompilerParams(
            dimension_semantics=("parallel", "parallel")),
    )(xf, gate)
    return out.reshape(n, c, h, w)


eca_layer_forward = jax.jit(_eca_forward)
# Variant that forces the streaming (tiled) path with 128-wide tiles; used for testing.
_eca_forward_streaming = jax.jit(functools.partial(
    _eca_forward, fast_path_limit_bytes=0, tile_target_bytes=0))


# --------------------------------------------------------------------------
# Pure-JAX reference of the PyTorch eca_layer (for the correctness check)
# --------------------------------------------------------------------------
def eca_layer_reference(x, conv_w):
    n, c, h, w = x.shape
    p = jnp.mean(x.astype(jnp.float32), axis=(2, 3))                 # (N, C)
    pp = jnp.pad(p, ((0, 0), (1, 1)))                                # zero pad=1
    wf = conv_w.astype(jnp.float32)
    y = wf[0] * pp[:, :c] + wf[1] * pp[:, 1:c + 1] + wf[2] * pp[:, 2:c + 2]
    g = jax.nn.sigmoid(y)
    return (x.astype(jnp.float32) * g[:, :, None, None]).astype(x.dtype)


# --------------------------------------------------------------------------
if __name__ == "__main__":
    key = jax.random.PRNGKey(0)
    kx, kw, kx2 = jax.random.split(key, 3)

    bound = 1.0 / math.sqrt(3.0)                 # PyTorch Conv1d(1,1,3) default init
    conv_w = jax.random.uniform(kw, (3,), jnp.float32, minval=-bound, maxval=bound)

    # 1) Fast (fully fused, VMEM-resident) path, f32 NCHW input.
    x = jax.random.normal(kx, (2, 64, 16, 16), jnp.float32)
    out = jax.block_until_ready(eca_layer_forward(x, conv_w))
    ref = eca_layer_reference(x, conv_w)
    assert out.shape == x.shape and out.dtype == x.dtype
    assert bool(jnp.all(jnp.isfinite(out)))
    err = float(jnp.max(jnp.abs(out - ref)))
    assert err < 1e-5, f"fast path max abs error vs reference: {err}"

    # 2) Fast path streaming native bf16 (output stays bf16, no f32 copy of x).
    xb = x.astype(jnp.bfloat16)
    outb = jax.block_until_ready(eca_layer_forward(xb, conv_w))
    refb = eca_layer_reference(xb, conv_w)
    assert outb.dtype == jnp.bfloat16
    errb = float(jnp.max(jnp.abs(outb.astype(jnp.float32) - refb.astype(jnp.float32))))
    assert errb < 5e-2, f"bf16 fast path max abs error vs reference: {errb}"

    # 3) Forced streaming (tiled) path with a ragged HW (576 not a multiple of 128).
    x2 = jax.random.normal(kx2, (2, 32, 24, 24), jnp.float32)
    out2 = jax.block_until_ready(_eca_forward_streaming(x2, conv_w))
    ref2 = eca_layer_reference(x2, conv_w)
    err2 = float(jnp.max(jnp.abs(out2 - ref2)))
    assert err2 < 1e-5, f"streaming path max abs error vs reference: {err2}"

    print("KERNEL_OK")
</pallas_src>

<mosaic_0001>
module attributes {stable_mosaic.version = 11 : i64} {
  func.func @_eca_fused_kernel(%arg0: i32, %arg1: memref<3xf32, #tpu.memory_space<smem>>, %arg2: memref<1x64x256xf32, #tpu.memory_space<vmem>>, %arg3: memref<1x64x256xf32, #tpu.memory_space<vmem>>) attributes {dimension_semantics = [#tpu.dimension_semantics<parallel>], iteration_bounds = array<i64: 2>, scalar_prefetch = 0 : i64, scratch_operands = 0 : i64, tpu.core_type = #tpu.core_type<tc>, window_params = [{transform_indices = @transform_0, window_bounds = array<i64: 3>}, {transform_indices = @transform_1, window_bounds = array<i64: 1, 64, 256>}, {transform_indices = @transform_2, window_bounds = array<i64: 1, 64, 256>}]} {
    %c0 = arith.constant 0 : index
    %c0_0 = arith.constant 0 : index
    %c0_1 = arith.constant 0 : index
    %0 = vector.load %arg2[%c0, %c0_0, %c0_1] : memref<1x64x256xf32, #tpu.memory_space<vmem>>, vector<1x64x256xf32>
    %cst = arith.constant dense<0.000000e+00> : vector<1x64xf32>
    %1 = vector.multi_reduction <add>, %0, %cst [2] : vector<1x64x256xf32> to vector<1x64xf32>
    %2 = vector.shape_cast %1 : vector<1x64xf32> to vector<1x64x1xf32>
    %cst_2 = arith.constant 3.906250e-03 : f32
    %3 = vector.broadcast %cst_2 : f32 to vector<1x64x1xf32>
    %4 = arith.mulf %2, %3 : vector<1x64x1xf32>
    %5 = vector.shape_cast %4 : vector<1x64x1xf32> to vector<64x1xf32>
    %6 = tpu.iota {dimensions = array<i32: 0>} : vector<64x64xi32>
    %7 = tpu.iota {dimensions = array<i32: 1>} : vector<64x64xi32>
    %8 = arith.subi %7, %6 : vector<64x64xi32>
    %c-1_i32 = arith.constant -1 : i32
    %9 = vector.broadcast %c-1_i32 : i32 to vector<64x64xi32>
    %10 = arith.cmpi eq, %8, %9 : vector<64x64xi32>
    %c0_3 = arith.constant 0 : index
    %11 = memref.load %arg1[%c0_3] : memref<3xf32, #tpu.memory_space<smem>>
    %cst_4 = arith.constant 0.000000e+00 : f32
    %12 = vector.broadcast %11 : f32 to vector<64x64xf32>
    %13 = vector.broadcast %cst_4 : f32 to vector<64x64xf32>
    %14 = arith.select %10, %12, %13 : vector<64x64xi1>, vector<64x64xf32>
    %c0_i32 = arith.constant 0 : i32
    %15 = vector.broadcast %c0_i32 : i32 to vector<64x64xi32>
    %16 = arith.cmpi eq, %8, %15 : vector<64x64xi32>
    %c1 = arith.constant 1 : index
    %17 = memref.load %arg1[%c1] : memref<3xf32, #tpu.memory_space<smem>>
    %cst_5 = arith.constant 0.000000e+00 : f32
    %18 = vector.broadcast %17 : f32 to vector<64x64xf32>
    %19 = vector.broadcast %cst_5 : f32 to vector<64x64xf32>
    %20 = arith.select %16, %18, %19 : vector<64x64xi1>, vector<64x64xf32>
    %21 = arith.addf %14, %20 : vector<64x64xf32>
    %c1_i32 = arith.constant 1 : i32
    %22 = vector.broadcast %c1_i32 : i32 to vector<64x64xi32>
    %23 = arith.cmpi eq, %8, %22 : vector<64x64xi32>
    %c2 = arith.constant 2 : index
    %24 = memref.load %arg1[%c2] : memref<3xf32, #tpu.memory_space<smem>>
    %cst_6 = arith.constant 0.000000e+00 : f32
    %25 = vector.broadcast %24 : f32 to vector<64x64xf32>
    %26 = vector.broadcast %cst_6 : f32 to vector<64x64xf32>
    %27 = arith.select %23, %25, %26 : vector<64x64xi1>, vector<64x64xf32>
    %28 = arith.addf %21, %27 : vector<64x64xf32>
    %cst_7 = arith.constant dense<0.000000e+00> : vector<64x1xf32>
    %29 = tpu.matmul %28, %5, %cst_7 {dimension_numbers = #tpu.dot_dimension_numbers<[1], [0], [0], [1], [0, 0, 1, 1], [], []>} : vector<64x64xf32>, vector<64x1xf32>, vector<64x1xf32> -> vector<64x1xf32>
    %30 = arith.negf %29 : vector<64x1xf32>
    %31 = math.exp %30 : vector<64x1xf32>
    %cst_8 = arith.constant 1.000000e+00 : f32
    %32 = vector.broadcast %cst_8 : f32 to vector<64x1xf32>
    %33 = arith.addf %32, %31 : vector<64x1xf32>
    %34 = arith.divf %32, %33 : vector<64x1xf32>
    %35 = vector.shape_cast %34 : vector<64x1xf32> to vector<1x64x1xf32>
    %36 = vector.broadcast %35 : vector<1x64x1xf32> to vector<1x64x256xf32>
    %37 = arith.mulf %0, %36 : vector<1x64x256xf32>
    %c0_9 = arith.constant 0 : index
    %c0_10 = arith.constant 0 : index
    %c0_11 = arith.constant 0 : index
    %38 = vector.load %arg3[%c0_9, %c0_10, %c0_11] : memref<1x64x256xf32, #tpu.memory_space<vmem>>, vector<1x64x256xf32>
    tpu.vector_store %arg3[%c0_9, %c0_10, %c0_11], %37 {strides = array<i32>} : memref<1x64x256xf32, #tpu.memory_space<vmem>>, vector<1x64x256xf32>,
    return
  }
  func.func @transform_0(%arg0: i32) -> i32 {
    %c0_i32 = arith.constant 0 : i32
    %c0_i32_0 = arith.constant 0 : i32
    return %c0_i32 : i32
  }
  func.func @transform_1(%arg0: i32) -> (i32, i32, i32) {
    %c0_i32 = arith.constant 0 : i32
    %c0_i32_0 = arith.constant 0 : i32
    %c0_i32_1 = arith.constant 0 : i32
    return %arg0, %c0_i32, %c0_i32_0 : i32, i32, i32
  }
  func.func @transform_2(%arg0: i32) -> (i32, i32, i32) {
    %c0_i32 = arith.constant 0 : i32
    %c0_i32_0 = arith.constant 0 : i32
    %c0_i32_1 = arith.constant 0 : i32
    return %arg0, %c0_i32, %c0_i32_0 : i32, i32, i32
  }
}

</mosaic_0001>

<bundles_post_ra>
// kernel: _eca_forward.1
= control target key start
LH: loop header
LB: loop body
LE: loop exit
PB: predicated region body
PF: predicated region fallthrough
CT: control target
= control target key end

     0   :  { %7 = vsyncpa [#allocation3], 0  ;;  %s803_s9 = smov 0   ;;  %s993_s0 = inlined_call_operand.vmem [shape: f32[3], index: 0, kind: input, shape index: {}]   ;;  %s994_s1 = inlined_call_operand.vmem [shape: f32[2,64,256], index: 1, kind: input, shape index: {}]   ;;  %s995_s2 = inlined_call_operand.vmem [shape: f32[2,64,256], index: 2, kind: output, shape index: {}]  }
   0x1 LB: > { %s612_s10 = sadd.s32 4294967295, %s784_s9   ;;  %p614_p0 = scmp.ge.s32.totalorder %s784_s9, 1  ;;  %s784_s9 = sphi %s803_s9, %s13_s9  }
   0x2   : > { %p91_p1 = scmp.lt.s32.totalorder %s784_s9, 3  ;;  %s104_s13 = sshll.u32 %s993_s0, 4  ;;  %s105_s13 = int_to_ptr.vmem [resolvable:$true] %s104_s13 }
   0x3   : > { %p713_p3 = scmp.eq.s32.totalorder %s612_s10, 0  ;;  %s759_s15 = scalar_lea.vmem %s105_s13, 16 }
   0x4   : > { %p814_p2 = pnand %p614_p0, %p91_p1  ;;  %p760_p6 = scmp.ne.s32.totalorder %s105_s13, %s759_s15 }
   0x5   : > { %p767_p10 = scmp.lt.s32.totalorder %s105_s13, %s105_s13  ;;  %p768_p11 = scmp.lt.s32.totalorder %s759_s15, %s759_s15 }
   0x6   : > { %p709_p4 = pneg %p814_p2 }
   0x7   : > { %p769_p12 = por %p768_p11, %p767_p10 }
   0x8   : > { %p710_p5 = pnand %p713_p3, %p709_p4 }
   0xa   : > { %p761_p7 = pneg %p710_p5 }
   0xc   : > { %p762_p8 = pnand %p761_p7, %p760_p6 }
   0xe   : > { %p763_p9 = pneg %p762_p8 }
  0x10   : > { %p770_p13 = pnand %p769_p12, %p763_p9 }
  0x12   : > { %773 = shalt.err (!%p770_p13)
}
  0x13   : > { %s786_s16 = smov [#allocation2]   ;;  %125 = sbr.rel (%p814_p2) target bundleno = 569 (0x239), region = 28 }
  0x14   : > { %712 = dma.vmem_to_smem (!%p710_p5), %s105_s13, 16, %s786_s16, [#allocation3]  }
  0x18   : > { %779 = dma.done.wait (%p713_p3), [#allocation3], 16  }
  0x19   : > { %781 = vsyncadd (%p713_p3), [#allocation3], 4294967280 }
  0x1a   : > { %131 = sfence }
  0x1b   : > { %p148_p0 = scmp.lt.s32.totalorder %s612_s10, 1  ;;  %v206_v24 = vlaneseq  ;;  %s233_s21 = sld [smem:[#allocation2]]  ;;  %vm295_vm8 = vcmask 523264  }
  0x1c   : > { %s623_s22 = sld [smem:[#allocation2 + $0x1]] }
  0x1d   : > { %s998_s10 = smov (!%p148_p0, %s612_s10), 1  ;;  %v881_v25 = vshrl.u32 %v206_v24, 7  ;;  %v883_v26 = vand.u32 127, %v206_v24  ;;  %s624_s23 = sld [smem:[#allocation2 + $0x2]] }
  0x1e   : > { %s643_s17 = sshll.u32 %s998_s10, 7 }
  0x1f   : > { %s152_s20 = scalar_lea.vmem %s994_s1, %s643_s17  ;;  %v208_v27 = vadd.s32 8, %v881_v25  ;;  %v217_v28 = vsub.s32 %v883_v26, %v881_v25  ;;  %v211_v29 = vadd.s32 32, %v881_v25  ;;  %v212_v31 = vadd.s32 40, %v881_v25  ;;  %s956_s26 = scalar_lea.vmem %s995_s2, %s643_s17 }
  0x20   : > { %v833_v0 = vld [vmem:[%s152_s20 + $0x70] sm:$0xff]  ;;  %v835_v1 = vld [vmem:[%s152_s20 + $0x78] sm:$0xff]  ;;  %v837_v2 = vld [vmem:[%s152_s20 + $0x60] sm:$0xff]  ;;  %v209_v51 = vadd.s32 16, %v881_v25  ;;  %v210_v52 = vadd.s32 24, %v881_v25  ;;  %v213_v60 = vadd.s32 48, %v881_v25 }
  0x21   : > { %v195_v3 = vadd.f32 %v835_v1, %v833_v0  ;;  %v841_v4 = vld [vmem:[%s152_s20 + $0x68] sm:$0xff]  ;;  %v843_v5 = vld [vmem:[%s152_s20 + $0x50] sm:$0xff]  ;;  %v845_v6 = vld [vmem:[%s152_s20 + $0x58] sm:$0xff]  ;;  %v218_v30 = vsub.s32 %v883_v26, %v208_v27  ;;  %vm225_vm0 = vcmp.eq.s32.totalorder %v217_v28, 4294967295  ;;  %v891_v32 = vstv %s233_s21 }
  0x22   : > { %v189_v7 = vadd.f32 %v845_v6, %v843_v5  ;;  %v849_v8 = vld [vmem:[%s152_s20 + $0x40] sm:$0xff]  ;;  %v851_v9 = vld [vmem:[%s152_s20 + $0x48] sm:$0xff]  ;;  %v192_v10 = vadd.f32 %v841_v4, %v837_v2  ;;  %v857_v12 = vld [vmem:[%s152_s20 + $0x30] sm:$0xff]  ;;  %vm243_vm1 = vcmp.eq.s32.totalorder %v217_v28, 0  ;;  %v221_v33 = vsub.s32 %v883_v26, %v211_v29 }
  0x23   : > { %196 = vadd.xlane.f32.xlu0 %v195_v3  ;;  %v186_v11 = vadd.f32 %v851_v9, %v849_v8  ;;  %v859_v13 = vld [vmem:[%s152_s20 + $0x38] sm:$0xff]  ;;  %v861_v14 = vld [vmem:[%s152_s20 + $0x20] sm:$0xff]  ;;  %v863_v15 = vld [vmem:[%s152_s20 + $0x28] sm:$0xff]  ;;  %v235_v34 = vsel %vm225_vm0, %v891_v32, 0.0  ;;  %v895_v35 = vstv %s623_s22  ;;  %vm226_vm2 = vcmp.eq.s32.totalorder %v218_v30, 4294967295 }
  0x24   : > { %190 = vadd.xlane.f32.xlu1 %v189_v7  ;;  %v183_v16 = vadd.f32 %v859_v13, %v857_v12  ;;  %v180_v17 = vadd.f32 %v863_v15, %v861_v14  ;;  %v869_v18 = vld [vmem:[%s152_s20 + $0x10] sm:$0xff]  ;;  %v871_v19 = vld [vmem:[%s152_s20 + $0x18] sm:$0xff]  ;;  %v873_v20 = vld [vmem:[%s152_s20] sm:$0xff]  ;;  %vm244_vm3 = vcmp.eq.s32.totalorder %v218_v30, 0  ;;  %v253_v36 = vsel %vm243_vm1, %v895_v35, 0.0 }
  0x25   : > { %v875_v21 = vld [vmem:[%s152_s20 + $0x8] sm:$0xff]  ;;  %v177_v22 = vadd.f32 %v871_v19, %v869_v18  ;;  %vm269_vm4 = vcmp.eq.s32.totalorder %v217_v28, 1  ;;  %v898_v37 = vstv %s624_s23  ;;  %v236_v38 = vsel %vm226_vm2, %v891_v32, 0.0 }
  0x26   : > { %v174_v23 = vadd.f32 %v875_v21, %v873_v20  ;;  %v261_v39 = vadd.f32 %v253_v36, %v235_v34  ;;  %v279_v40 = vsel %vm269_vm4, %v898_v37, 0.0  ;;  %v254_v41 = vsel %vm244_vm3, %v895_v35, 0.0 }
  0x27   : > { %193 = vadd.xlane.f32.xlu0 %v192_v10  ;;  %vm270_vm5 = vcmp.eq.s32.totalorder %v218_v30, 1  ;;  %v262_v42 = vadd.f32 %v254_v41, %v236_v38  ;;  %vm229_vm6 = vcmp.eq.s32.totalorder %v221_v33, 4294967295  ;;  %vm247_vm7 = vcmp.eq.s32.totalorder %v221_v33, 0 }
  0x28   : > { %187 = vadd.xlane.f32.xlu1 %v186_v11  ;;  %v280_v43 = vsel %vm270_vm5, %v898_v37, 0.0  ;;  %v287_v44 = vadd.f32 %v279_v40, %v261_v39  ;;  %v239_v45 = vsel %vm229_vm6, %v891_v32, 0.0  ;;  %v257_v46 = vsel %vm247_vm7, %v895_v35, 0.0 }
  0x29   : > { %v906_v47 = vadd.f32 %v280_v43, %v262_v42  ;;  %v265_v48 = vadd.f32 %v257_v46, %v239_v45  ;;  %vm273_vm9 = vcmp.eq.s32.totalorder %v221_v33, 1  ;;  %v222_v49 = vsub.s32 %v883_v26, %v212_v31 }
  0x2a   : > { %677 = vmatprep.mubr.msk.f32.mxu0 %vm295_vm8, %v287_v44  ;;  %v283_v50 = vsel %vm273_vm9, %v898_v37, 0.0  ;;  %v219_v57 = vsub.s32 %v883_v26, %v209_v51  ;;  %v220_v59 = vsub.s32 %v883_v26, %v210_v52  ;;  %v214_v24 = vadd.s32 56, %v881_v25 }
  0x2b   : > { %184 = vadd.xlane.f32.xlu0 %v183_v16  ;;  %v291_v53 = vadd.f32 %v283_v50, %v265_v48  ;;  %vm230_vm10 = vcmp.eq.s32.totalorder %v222_v49, 4294967295  ;;  %vm248_vm11 = vcmp.eq.s32.totalorder %v222_v49, 0  ;;  %vm274_vm12 = vcmp.eq.s32.totalorder %v222_v49, 1 }
  0x2c   : > { %181 = vadd.xlane.f32.xlu1 %v180_v17  ;;  %v240_v54 = vsel %vm230_vm10, %v891_v32, 0.0  ;;  %v258_v55 = vsel %vm248_vm11, %v895_v35, 0.0  ;;  %v284_v56 = vsel %vm274_vm12, %v898_v37, 0.0  ;;  %vm227_vm13 = vcmp.eq.s32.totalorder %v219_v57, 4294967295 }
  0x2d   : > { %683 = vmatprep.mubr.msk.f32.mxu1 %vm295_vm8, %v291_v53  ;;  %v266_v58 = vadd.f32 %v258_v55, %v240_v54  ;;  %vm245_vm14 = vcmp.eq.s32.totalorder %v219_v57, 0  ;;  %vm271_vm15 = vcmp.eq.s32.totalorder %v219_v57, 1  ;;  %v237_v62 = vsel %vm227_vm13, %v891_v32, 0.0 }
  0x2e   : > { %v255_v63 = vsel %vm245_vm14, %v895_v35, 0.0  ;;  %v281_v3 = vsel %vm271_vm15, %v898_v37, 0.0  ;;  %vm228_vm0 = vcmp.eq.s32.totalorder %v220_v59, 4294967295  ;;  %vm246_vm1 = vcmp.eq.s32.totalorder %v220_v59, 0 }
  0x2f   : > { %178 = vadd.xlane.f32.xlu0 %v177_v22  ;;  %v920_v61 = vadd.f32 %v284_v56, %v266_v58  ;;  %v263_v7 = vadd.f32 %v255_v63, %v237_v62  ;;  %vm272_vm2 = vcmp.eq.s32.totalorder %v220_v59, 1  ;;  %v238_v10 = vsel %vm228_vm0, %v891_v32, 0.0 }
  0x30   : > { %175 = vadd.xlane.f32.xlu1 %v174_v23  ;;  %v256_v11 = vsel %vm246_vm1, %v895_v35, 0.0  ;;  %v282_v16 = vsel %vm272_vm2, %v898_v37, 0.0  ;;  %v223_v17 = vsub.s32 %v883_v26, %v213_v60  ;;  %v224_v33 = vsub.s32 %v883_v26, %v214_v24 }
  0x31   : > { %v929_v22 = vadd.f32 %v281_v3, %v263_v7  ;;  %v264_v23 = vadd.f32 %v256_v11, %v238_v10  ;;  %v787_v54 = vmov 0  }
  0x32   : > { %vm231_vm3 = vcmp.eq.s32.totalorder %v223_v17, 4294967295  ;;  %vm249_vm4 = vcmp.eq.s32.totalorder %v223_v17, 0  ;;  %vm275_vm5 = vcmp.eq.s32.totalorder %v223_v17, 1  ;;  %vm232_vm6 = vcmp.eq.s32.totalorder %v224_v33, 4294967295  ;;  %726 = vset.pattern.permute.xlu1 %v787_v54  ;;  %725 = vset.pattern.permute.xlu0 %v787_v54 }
  0x33   : > { %v932_v27 = vadd.f32 %v282_v16, %v264_v23  ;;  %v241_v28 = vsel %vm231_vm3, %v891_v32, 0.0  ;;  %v259_v29 = vsel %vm249_vm4, %v895_v35, 0.0  ;;  %v285_v30 = vsel %vm275_vm5, %v898_v37, 0.0 }
  0x34   : > { %v267_v31 = vadd.f32 %v259_v29, %v241_v28  ;;  %vm250_vm7 = vcmp.eq.s32.totalorder %v224_v33, 0  ;;  %vm276_vm9 = vcmp.eq.s32.totalorder %v224_v33, 1  ;;  %v242_v25 = vsel %vm232_vm6, %v891_v32, 0.0 }
  0x35   : > { %v260_v36 = vsel %vm250_vm7, %v895_v35, 0.0  ;;  %v286_v38 = vsel %vm276_vm9, %v898_v37, 0.0 }
  0x36   : > { %v293_v34 = vadd.f32 %v285_v30, %v267_v31  ;;  %v268_v39 = vadd.f32 %v260_v36, %v242_v25 }
  0x38   : > { %v294_v40 = vadd.f32 %v286_v38, %v268_v39 }
  0xac   : > { %v197_v41 = vpop.xlane.xlu0 %196 }
  0xad   : > { %v205_v42 = vmul.f32 0.00390625, %v197_v41  ;;  %v191_v43 = vpop.xlane.xlu1 %190 }
  0xae   : > { %v203_v46 = vmul.f32 0.00390625, %v191_v43 }
  0xaf   : > { %661 = vmatprep.subr.mxu0 %v205_v42  ;;  %689 = vmatprep.subr.mxu1 %v205_v42 }
  0xb0   : > { %662 = vmatpush3.msra.mxu0 %v205_v42  ;;  %697 = vmatpush3.msra.mxu1 %v205_v42  ;;  %v194_v26 = vpop.xlane.xlu0 %193 }
  0xb1   : > { %v204_v44 = vmul.f32 0.00390625, %v194_v26  ;;  %v188_v45 = vpop.xlane.xlu1 %187 }
  0xb2   : > { %v202_v32 = vmul.f32 0.00390625, %v188_v45 }
  0xb3   : > { %663 = vmatprep.subr.mxu0 %v204_v44  ;;  %690 = vmatprep.subr.mxu1 %v204_v44 }
  0xb4   : > { %664 = vmatpush3.msra.mxu0 %v204_v44  ;;  %698 = vmatpush3.msra.mxu1 %v204_v44  ;;  %v185_v35 = vpop.xlane.xlu0 %184 }
  0xb5   : > { %665 = vmatprep.subr.mxu0 %v203_v46  ;;  %691 = vmatprep.subr.mxu1 %v203_v46  ;;  %v201_v37 = vmul.f32 0.00390625, %v185_v35  ;;  %v182_v48 = vpop.xlane.xlu1 %181 }
  0xb6   : > { %666 = vmatpush3.msra.mxu0 %v203_v46  ;;  %699 = vmatpush3.msra.mxu1 %v203_v46  ;;  %v200_v49 = vmul.f32 0.00390625, %v182_v48 }
  0xb7   : > { %667 = vmatprep.subr.mxu0 %v202_v32  ;;  %692 = vmatprep.subr.mxu1 %v202_v32 }
  0xb8   : > { %668 = vmatpush3.msra.mxu0 %v202_v32  ;;  %700 = vmatpush3.msra.mxu1 %v202_v32  ;;  %v179_v50 = vpop.xlane.xlu0 %178 }
  0xb9   : > { %669 = vmatprep.subr.mxu0 %v201_v37  ;;  %693 = vmatprep.subr.mxu1 %v201_v37  ;;  %v199_v51 = vmul.f32 0.00390625, %v179_v50  ;;  %v176_v52 = vpop.xlane.xlu1 %175 }
  0xba   : > { %670 = vmatpush3.msra.mxu0 %v201_v37  ;;  %701 = vmatpush3.msra.mxu1 %v201_v37  ;;  %v198_v53 = vmul.f32 0.00390625, %v176_v52 }
  0xbb   : > { %671 = vmatprep.subr.mxu0 %v200_v49  ;;  %694 = vmatprep.subr.mxu1 %v200_v49 }
  0xbc   : > { %672 = vmatpush3.msra.mxu0 %v200_v49  ;;  %702 = vmatpush3.msra.mxu1 %v200_v49 }
  0xbd   : > { %673 = vmatprep.subr.mxu0 %v199_v51  ;;  %695 = vmatprep.subr.mxu1 %v199_v51 }
  0xbe   : > { %674 = vmatpush3.msra.mxu0 %v199_v51  ;;  %703 = vmatpush3.msra.mxu1 %v199_v51 }
  0xbf   : > { %675 = vmatprep.subr.mxu0 %v198_v53  ;;  %696 = vmatprep.subr.mxu1 %v198_v53 }
  0xc0   : > { %676 = vmatpush3.msra.mxu0 %v198_v53  ;;  %704 = vmatpush3.msra.mxu1 %v198_v53 }
  0xc1   : > { %678 = vmatmul.mubr.msk.f32.vlgmr.msra.gmra.mxu0 %vm295_vm8, %v906_v47  ;;  %684 = vmatmul.mubr.msk.f32.vlgmr.msra.gmra.mxu1 %vm295_vm8, %v920_v61 }
  0xc2   : > { %680 = vmatprep.mubr.msk.f32.mxu0 %vm295_vm8, %v929_v22  ;;  %686 = vmatprep.mubr.msk.f32.mxu1 %vm295_vm8, %v293_v34 }
  0xc5   : > { %681 = vmatmul.mubr.msk.f32.gmra.mxu0 %vm295_vm8, %v932_v27  ;;  %687 = vmatmul.mubr.msk.f32.gmra.mxu1 %vm295_vm8, %v294_v40 }
 0x181   : > { %v679_v55 = vpop.f32.mrf.mxu0  ;;  %v685_v56 = vpop.f32.mrf.mxu1 }
 0x182   : > { %v634_v57 = vmul.f32 -1.442695, %v679_v55  ;;  %v638_v47 = vmul.f32 -1.442695, %v685_v56 }
 0x183   : > { %v386_v58 = vpop.f32.mrf.mxu0  ;;  %v406_v59 = vpop.f32.mrf.mxu1 }
 0x184   : > { %727 = vpow2.f32 %v634_v57  ;;  %v633_v60 = vmul.f32 -1.442695, %v386_v58  ;;  %v637_v61 = vmul.f32 -1.442695, %v406_v59 }
 0x185   : > { %729 = vpow2.f32 %v638_v47  ;;  %v682_v62 = vpop.f32.mrf.mxu0  ;;  %v688_v3 = vpop.f32.mrf.mxu1 }
 0x186   : > { %731 = vpow2.f32 %v633_v60  ;;  %v636_v63 = vmul.f32 -1.442695, %v682_v62  ;;  %v640_v29 = vmul.f32 -1.442695, %v688_v3 }
 0x187   : > { %733 = vpow2.f32 %v637_v61  ;;  %v396_v7 = vpop.f32.mrf.mxu0  ;;  %v416_v11 = vpop.f32.mrf.mxu1 }
 0x188   : > { %735 = vpow2.f32 %v636_v63  ;;  %v635_v10 = vmul.f32 -1.442695, %v396_v7  ;;  %v639_v16 = vmul.f32 -1.442695, %v416_v11 }
 0x18a   : > { %737 = vpow2.f32 %v635_v10 }
 0x18b   : > { %739 = vpow2.f32 %v639_v16 }
 0x191   : > { %v728_v17 = vpop.eup %727 }
 0x192   : > { %v730_v22 = vpop.eup %729  ;;  %v450_v23 = vadd.f32 1.0, %v728_v17 }
 0x193   : > { %v732_v24 = vpop.eup %731  ;;  %v454_v27 = vadd.f32 1.0, %v730_v22 }
 0x194   : > { %741 = vrcp.f32 %v450_v23  ;;  %v449_v28 = vadd.f32 1.0, %v732_v24  ;;  %v734_v30 = vpop.eup %733 }
 0x195   : > { %743 = vrcp.f32 %v454_v27  ;;  %v736_v31 = vpop.eup %735  ;;  %v453_v33 = vadd.f32 1.0, %v734_v30 }
 0x196   : > { %745 = vrcp.f32 %v449_v28  ;;  %v452_v34 = vadd.f32 1.0, %v736_v31 }
 0x197   : > { %747 = vpow2.f32 %v640_v29  ;;  %v738_v25 = vpop.eup %737 }
 0x198   : > { %749 = vrcp.f32 %v453_v33  ;;  %v740_v36 = vpop.eup %739  ;;  %v451_v38 = vadd.f32 1.0, %v738_v25 }
 0x199   : > { %751 = vrcp.f32 %v452_v34  ;;  %v455_v42 = vadd.f32 1.0, %v740_v36 }
 0x19a   : > { %753 = vrcp.f32 %v451_v38 }
 0x19b   : > { %755 = vrcp.f32 %v455_v42 }
 0x1a1   : > { %v742_v39 = vpop.eup %741 }
 0x1a2   : > { %v744_v40 = vpop.eup %743  ;;  %480 = vperm.xlu1 %726, %v742_v39  }
 0x1a3   : > { %v746_v41 = vpop.eup %745 }
 0x1a4   : > { %475 = vperm.xlu0 %725, %v746_v41   ;;  %v748_v43 = vpop.eup %747 }
 0x1a5   : > { %v456_v26 = vadd.f32 1.0, %v748_v43  ;;  %v750_v44 = vpop.eup %749 }
 0x1a6   : > { %500 = vperm.xlu1 %726, %v744_v40   ;;  %v752_v45 = vpop.eup %751 }
 0x1a7   : > { %757 = vrcp.f32 %v456_v26  ;;  %v754_v46 = vpop.eup %753 }
 0x1a8   : > { %v756_v32 = vpop.eup %755 }
 0x1aa   : > { %495 = vperm.xlu1 %726, %v750_v44  }
 0x1ae   : > { %490 = vperm.xlu1 %726, %v752_v45  }
 0x1b2   : > { %485 = vperm.xlu1 %726, %v754_v46  }
 0x1b4   : > { %v758_v35 = vpop.eup %757 }
 0x1b6   : > { %505 = vperm.xlu1 %726, %v756_v32  }
 0x1ba   : > { %510 = vperm.xlu1 %726, %v758_v35  }
 0x21d   : > { %v481_v37 = vpop.permute.xlu1 %480 }
 0x21e   : > { %v515_v48 = vmul.f32 %v481_v37, %v869_v18  ;;  %v516_v49 = vmul.f32 %v481_v37, %v871_v19 }
 0x21f   : > { %v476_v50 = vpop.permute.xlu0 %475 }
 0x220   : > { %531 = vst [vmem:[%s956_s26 + $0x10] sm:$0xff] %v515_v48  ;;  %532 = vst [vmem:[%s956_s26 + $0x18] sm:$0xff] %v516_v49  ;;  %v513_v51 = vmul.f32 %v476_v50, %v873_v20  ;;  %v514_v52 = vmul.f32 %v476_v50, %v875_v21 }
 0x221   : > { %v501_v53 = vpop.permute.xlu1 %500 }
 0x222   : > { %529 = vst [vmem:[%s956_s26] sm:$0xff] %v513_v51  ;;  %530 = vst [vmem:[%s956_s26 + $0x8] sm:$0xff] %v514_v52  ;;  %v523_v54 = vmul.f32 %v501_v53, %v843_v5  ;;  %v524_v18 = vmul.f32 %v501_v53, %v845_v6 }
 0x224   : > { %539 = vst [vmem:[%s956_s26 + $0x50] sm:$0xff] %v523_v54  ;;  %540 = vst [vmem:[%s956_s26 + $0x58] sm:$0xff] %v524_v18 }
 0x225   : > { %v496_v19 = vpop.permute.xlu1 %495 }
 0x226   : > { %v521_v55 = vmul.f32 %v496_v19, %v849_v8  ;;  %v522_v20 = vmul.f32 %v496_v19, %v851_v9 }
 0x228   : > { %537 = vst [vmem:[%s956_s26 + $0x40] sm:$0xff] %v521_v55  ;;  %538 = vst [vmem:[%s956_s26 + $0x48] sm:$0xff] %v522_v20 }
 0x229   : > { %v491_v21 = vpop.permute.xlu1 %490 }
 0x22a   : > { %v519_v56 = vmul.f32 %v491_v21, %v857_v12  ;;  %v520_v5 = vmul.f32 %v491_v21, %v859_v13 }
 0x22c   : > { %535 = vst [vmem:[%s956_s26 + $0x30] sm:$0xff] %v519_v56  ;;  %536 = vst [vmem:[%s956_s26 + $0x38] sm:$0xff] %v520_v5 }
 0x22d   : > { %v486_v6 = vpop.permute.xlu1 %485 }
 0x22e   : > { %v517_v57 = vmul.f32 %v486_v6, %v861_v14  ;;  %v518_v8 = vmul.f32 %v486_v6, %v863_v15 }
 0x230   : > { %533 = vst [vmem:[%s956_s26 + $0x20] sm:$0xff] %v517_v57  ;;  %534 = vst [vmem:[%s956_s26 + $0x28] sm:$0xff] %v518_v8 }
 0x231   : > { %v506_v9 = vpop.permute.xlu1 %505 }
 0x232   : > { %v525_v47 = vmul.f32 %v506_v9, %v837_v2  ;;  %v526_v58 = vmul.f32 %v506_v9, %v841_v4 }
 0x234   : > { %541 = vst [vmem:[%s956_s26 + $0x60] sm:$0xff] %v525_v47  ;;  %542 = vst [vmem:[%s956_s26 + $0x68] sm:$0xff] %v526_v58 }
 0x235   : > { %v511_v12 = vpop.permute.xlu1 %510 }
 0x236   : > { %v527_v13 = vmul.f32 %v511_v12, %v833_v0  ;;  %v528_v59 = vmul.f32 %v511_v12, %v835_v1 }
 0x238   : > { %543 = vst [vmem:[%s956_s26 + $0x70] sm:$0xff] %v527_v13  ;;  %544 = vst [vmem:[%s956_s26 + $0x78] sm:$0xff] %v528_v59 }
 0x239 PF: > { %s13_s9 = sadd.s32 1, %s784_s9  }
 0x23a   : > { %p10_p1 = scmp.ge.s32.totalorder %s13_s9, 4  }
 0x23c   :  { %12 = sbr.rel (!%p10_p1) target bundleno = 1 (0x1), region = 63 }
 0x241   :  { %566 = vsyncpa [#allocation3], 1 }
 0x242   :  { %568 = vsyncpa [#allocation3 + $0x1], 1 }

</bundles_post_ra>
